<compile_context>
chip_gen: v5e
topology: v5e:2x2
jax: 0.10.0
libtpu: 0.0.40
codegen_flags: <defaults>
</compile_context>

<pallas_src>
import math

import jax
import jax.numpy as jnp
from jax.experimental import pallas as pl
from jax.experimental.pallas import tpu as pltpu


def _round_up(x, m):
    return ((x + m - 1) // m) * m


def baseline_decoder_kernel(latent_ref, w1_ref, b1_ref, rho_wt_ref, rho_ref):
    # Linear with BN pre-folded into w1/b1 (wrapper-side) -> MXU, f32 accumulation.
    h = jnp.dot(latent_ref[...], w1_ref[...], preferred_element_type=jnp.float32)
    h = h + b1_ref[...]
    # ReLU (Dropout(0.2) is identity in eval mode); epilogue stays f32.
    h = jnp.maximum(h, 0.0)
    # rho tile: (B_tile, H) @ (H, G_tile) -> MXU. Rho weights are already (K, N),
    # so no in-kernel transpose/relayout is needed.
    rho_ref[...] = jnp.dot(h.astype(rho_wt_ref.dtype), rho_wt_ref[...],
                           preferred_element_type=jnp.float32)


def baseline_decoder_forward(latent, genes_oi, params, n_output_components,
                             *, compute_dtype=jnp.bfloat16,
                             b_tile_max=256, g_tile_max=512):
    w1, b1, gamma, beta, rmean, rvar, rho_weight = params
    B = latent.shape[0]
    G = genes_oi.shape[0]
    n_latent, H = w1.shape

    # ---- Wrapper-side algebra (done once per parameter set) -------------------
    # Fold eval-mode BatchNorm affine into the Linear:
    #   y = ((x@w1 + b1) - mean) * gamma * rsqrt(var+eps) + beta
    #     = x @ (w1 * s) + ((b1 - mean) * s + beta),  s = gamma * rsqrt(var+eps)
    scale = gamma * jax.lax.rsqrt(rvar + 1e-5)
    w1_folded = w1 * scale[None, :]
    b1_folded = ((b1 - rmean) * scale + beta).reshape(1, H).astype(jnp.float32)

    # Gather the sparse embedding rows and pre-transpose to (H, G): lane axis = genes.
    # TODO(synk): for very large G this gather could be fused into the kernel via
    #             PrefetchScalarGridSpec index_maps instead of a materialized XLA gather.
    rho_wt = jnp.take(rho_weight, genes_oi, axis=0).T  # (H, G)

    # bf16 MXU operands; f32 accumulation happens inside the kernel.
    latent_c = latent.astype(compute_dtype)
    w1_c = w1_folded.astype(compute_dtype)
    rho_wt_c = rho_wt.astype(compute_dtype)

    # ---- Tiling / padding: lane-dense output (G tiles are multiples of 128) ---
    b_tile = min(_round_up(B, 8), b_tile_max)
    g_tile = min(_round_up(G, 128), g_tile_max)
    B_pad = _round_up(B, b_tile)
    G_pad = _round_up(G, g_tile)

    if B_pad != B:
        latent_c = jnp.pad(latent_c, ((0, B_pad - B), (0, 0)))
    if G_pad != G:
        rho_wt_c = jnp.pad(rho_wt_c, ((0, 0), (0, G_pad - G)))

    grid = (B_pad // b_tile, G_pad // g_tile)

    rho_pad = pl.pallas_call(
        baseline_decoder_kernel,
        out_shape=jax.ShapeDtypeStruct((B_pad, G_pad), jnp.float32),
        grid=grid,
        in_specs=[
            pl.BlockSpec((b_tile, n_latent), lambda bi, gi: (bi, 0)),   # latent
            pl.BlockSpec((n_latent, H), lambda bi, gi: (0, 0)),         # folded w1
            pl.BlockSpec((1, H), lambda bi, gi: (0, 0)),                # folded bias
            pl.BlockSpec((H, g_tile), lambda bi, gi: (0, gi)),          # rho_w^T tile
        ],
        out_specs=pl.BlockSpec((b_tile, g_tile), lambda bi, gi: (bi, gi)),
        compiler_params=pltpu.CompilerParams(
            dimension_semantics=("parallel", "parallel")),
    )(latent_c, w1_c, b1_folded, rho_wt_c)

    rho = rho_pad[:B, :G]

    # torch .squeeze(-1): only collapses if the gene axis has size 1.
    if rho.shape[-1] == 1:
        rho = rho.reshape(rho.shape[0])

    # Part of the module's output contract (lazy/cheap zeros under jit).
    logit = jnp.zeros((B, G, n_output_components), dtype=jnp.float32)
    return logit, rho


def init_params(key, n_latent, n_hidden, n_genes):
    """Deterministic init mirroring the PyTorch module's __init__ (n_layers=1)."""
    k_w, k_b, k_rho = jax.random.split(key, 3)

    # torch.nn.Linear default: U(-1/sqrt(fan_in), 1/sqrt(fan_in)) for weight & bias.
    bound = 1.0 / math.sqrt(n_latent)
    w1 = jax.random.uniform(k_w, (n_latent, n_hidden), jnp.float32, -bound, bound)
    b1 = jax.random.uniform(k_b, (n_hidden,), jnp.float32, -bound, bound)

    # BatchNorm1d defaults.
    gamma = jnp.ones((n_hidden,), jnp.float32)
    beta = jnp.zeros((n_hidden,), jnp.float32)
    rmean = jnp.zeros((n_hidden,), jnp.float32)
    rvar = jnp.ones((n_hidden,), jnp.float32)

    # rho_weight: U(-stdv, stdv), stdv = 1/sqrt(n_hidden)/100.
    stdv = 1.0 / math.sqrt(n_hidden) / 100.0
    rho_weight = jax.random.uniform(k_rho, (n_genes, n_hidden), jnp.float32, -stdv, stdv)

    return (w1, b1, gamma, beta, rmean, rvar, rho_weight)


def reference_forward(latent, genes_oi, params, n_output_components):
    """Pure-JAX f32 reference of the eval-mode PyTorch forward."""
    w1, b1, gamma, beta, rmean, rvar, rho_weight = params
    h = latent @ w1 + b1
    h = (h - rmean) / jnp.sqrt(rvar + 1e-5) * gamma + beta
    h = jnp.maximum(h, 0.0)
    rho = h @ rho_weight[genes_oi].T
    logit = jnp.zeros((latent.shape[0], genes_oi.shape[0], n_output_components), jnp.float32)
    return logit, rho


if __name__ == "__main__":
    n_latent = 16
    n_hidden = 32
    n_genes = 64
    n_output_components = 3
    batch = 8
    n_genes_oi = 16

    key = jax.random.PRNGKey(0)
    k_params, k_latent, k_genes = jax.random.split(key, 3)

    params = init_params(k_params, n_latent, n_hidden, n_genes)
    latent = jax.random.normal(k_latent, (batch, n_latent), jnp.float32)
    genes_oi = jax.random.permutation(k_genes, n_genes)[:n_genes_oi]

    logit, rho = baseline_decoder_forward(latent, genes_oi, params, n_output_components)
    jax.block_until_ready((logit, rho))

    logit_ref, rho_ref = reference_forward(latent, genes_oi, params, n_output_components)
    assert logit.shape == (batch, n_genes_oi, n_output_components)
    assert rho.shape == (batch, n_genes_oi)
    assert jnp.allclose(logit, logit_ref)
    # bf16 MXU operands with f32 accumulation -> slightly looser tolerance vs f32 ref.
    assert jnp.allclose(rho, rho_ref, atol=5e-4, rtol=5e-2)

    print("KERNEL_OK")
</pallas_src>

<mosaic_0001>
module attributes {stable_mosaic.version = 11 : i64} {
  func.func @baseline_decoder_kernel(%arg0: i32, %arg1: i32, %arg2: memref<8x16xbf16, #tpu.memory_space<vmem>>, %arg3: memref<16x32xbf16, #tpu.memory_space<vmem>>, %arg4: memref<1x32xf32, #tpu.memory_space<vmem>>, %arg5: memref<32x128xbf16, #tpu.memory_space<vmem>>, %arg6: memref<8x128xf32, #tpu.memory_space<vmem>>) attributes {dimension_semantics = [#tpu.dimension_semantics<parallel>, #tpu.dimension_semantics<parallel>], iteration_bounds = array<i64: 1, 1>, scalar_prefetch = 0 : i64, scratch_operands = 0 : i64, tpu.core_type = #tpu.core_type<tc>, window_params = [{transform_indices = @transform_0, window_bounds = array<i64: 8, 16>}, {pipeline_mode = #tpu.pipeline_mode<synchronous>, transform_indices = @transform_1, window_bounds = array<i64: 16, 32>}, {pipeline_mode = #tpu.pipeline_mode<synchronous>, transform_indices = @transform_2, window_bounds = array<i64: 1, 32>}, {transform_indices = @transform_3, window_bounds = array<i64: 32, 128>}, {transform_indices = @transform_4, window_bounds = array<i64: 8, 128>}]} {
    %c0 = arith.constant 0 : index
    %c0_0 = arith.constant 0 : index
    %0 = vector.load %arg2[%c0, %c0_0] : memref<8x16xbf16, #tpu.memory_space<vmem>>, vector<8x16xbf16>
    %c0_1 = arith.constant 0 : index
    %c0_2 = arith.constant 0 : index
    %1 = vector.load %arg3[%c0_1, %c0_2] : memref<16x32xbf16, #tpu.memory_space<vmem>>, vector<16x32xbf16>
    %cst = arith.constant dense<0.000000e+00> : vector<8x32xf32>
    %2 = tpu.matmul %0, %1, %cst {dimension_numbers = #tpu.dot_dimension_numbers<[1], [0], [0], [1], [0, 0, 1, 1], [], []>} : vector<8x16xbf16>, vector<16x32xbf16>, vector<8x32xf32> -> vector<8x32xf32>
    %c0_3 = arith.constant 0 : index
    %c0_4 = arith.constant 0 : index
    %3 = vector.load %arg4[%c0_3, %c0_4] : memref<1x32xf32, #tpu.memory_space<vmem>>, vector<1x32xf32>
    %4 = vector.broadcast %3 : vector<1x32xf32> to vector<8x32xf32>
    %5 = arith.addf %2, %4 : vector<8x32xf32>
    %cst_5 = arith.constant 0.000000e+00 : f32
    %6 = vector.broadcast %cst_5 : f32 to vector<8x32xf32>
    %7 = arith.maximumf %5, %6 : vector<8x32xf32>
    %8 = arith.truncf %7 : vector<8x32xf32> to vector<8x32xbf16>
    %c0_6 = arith.constant 0 : index
    %c0_7 = arith.constant 0 : index
    %9 = vector.load %arg5[%c0_6, %c0_7] : memref<32x128xbf16, #tpu.memory_space<vmem>>, vector<32x128xbf16>
    %cst_8 = arith.constant dense<0.000000e+00> : vector<8x128xf32>
    %10 = tpu.matmul %8, %9, %cst_8 {dimension_numbers = #tpu.dot_dimension_numbers<[1], [0], [0], [1], [0, 0, 1, 1], [], []>} : vector<8x32xbf16>, vector<32x128xbf16>, vector<8x128xf32> -> vector<8x128xf32>
    %c0_9 = arith.constant 0 : index
    %c0_10 = arith.constant 0 : index
    %11 = vector.load %arg6[%c0_9, %c0_10] : memref<8x128xf32, #tpu.memory_space<vmem>>, vector<8x128xf32>
    tpu.vector_store %arg6[%c0_9, %c0_10], %10 {strides = array<i32>} : memref<8x128xf32, #tpu.memory_space<vmem>>, vector<8x128xf32>,
    return
  }
  func.func @transform_0(%arg0: i32, %arg1: i32) -> (i32, i32) {
    %c0_i32 = arith.constant 0 : i32
    %c0_i32_0 = arith.constant 0 : i32
    return %arg0, %c0_i32 : i32, i32
  }
  func.func @transform_1(%arg0: i32, %arg1: i32) -> (i32, i32) {
    %c0_i32 = arith.constant 0 : i32
    %c0_i32_0 = arith.constant 0 : i32
    %c0_i32_1 = arith.constant 0 : i32
    return %c0_i32, %c0_i32_0 : i32, i32
  }
  func.func @transform_2(%arg0: i32, %arg1: i32) -> (i32, i32) {
    %c0_i32 = arith.constant 0 : i32
    %c0_i32_0 = arith.constant 0 : i32
    %c0_i32_1 = arith.constant 0 : i32
    return %c0_i32, %c0_i32_0 : i32, i32
  }
  func.func @transform_3(%arg0: i32, %arg1: i32) -> (i32, i32) {
    %c0_i32 = arith.constant 0 : i32
    %c0_i32_0 = arith.constant 0 : i32
    return %c0_i32, %arg1 : i32, i32
  }
  func.func @transform_4(%arg0: i32, %arg1: i32) -> (i32, i32) {
    %c0_i32 = arith.constant 0 : i32
    return %arg0, %arg1 : i32, i32
  }
}

</mosaic_0001>

<bundles_post_ra>
// kernel: tpu_custom_call.1
= control target key start
LH: loop header
LB: loop body
LE: loop exit
PB: predicated region body
PF: predicated region fallthrough
CT: control target
= control target key end

     0   :  { %9 = vsyncpa [#allocation3], 0  ;;  %s320_s0 = inlined_call_operand.hbm [shape: bf16[8,16], index: 0, kind: input, shape index: {}]   ;;  %s321_s1 = inlined_call_operand.hbm [shape: bf16[16,32], index: 1, kind: input, shape index: {}]   ;;  %s322_s2 = inlined_call_operand.vmem [shape: f32[1,32], index: 2, kind: input, shape index: {}]   ;;  %s323_s3 = inlined_call_operand.hbm [shape: bf16[32,128], index: 3, kind: input, shape index: {}]   ;;  %s324_s4 = inlined_call_operand.hbm [shape: f32[8,128], index: 4, kind: output, shape index: {}]  }
   0x1   :  { %10 = vsyncpa [#allocation6], 0  ;;  %s27_s17 = sshll.u32 %s321_s1, 4  ;;  %s28_s17 = int_to_ptr.hbm [resolvable:$true] %s27_s17 }
   0x2   :  { %11 = vsyncpa [#allocation4], 0  ;;  %s274_s18 = smov [#allocation5]   ;;  %s17_s22 = sshll.u32 %s320_s0, 4  ;;  %s18_s22 = int_to_ptr.hbm [resolvable:$true] %s17_s22 }
   0x3   :  { %s29_s19 = sshll.u32 %s274_s18, 4  ;;  %s275_s23 = smov 64   ;;  %s30_s19 = int_to_ptr.vmem [resolvable:$true] %s29_s19 }
   0x4   :  { %s276_s24 = smov 4   ;;  %s277_s25 = smov [#allocation2]  }
   0x5   :  { %35 = dma.hbm_to_vmem [thread:$0]  %s28_s17, 128, %s30_s19, [#allocation6], %s275_s23, %s275_s23, %s276_s24  }
   0x6   :  { %s19_s26 = sshll.u32 %s277_s25, 4  ;;  %s42_s29 = sshll.u32 %s323_s3, 4  ;;  %s20_s26 = int_to_ptr.vmem [resolvable:$true] %s19_s26  ;;  %s43_s29 = int_to_ptr.hbm [resolvable:$true] %s42_s29 }
   0x7   :  { %22 = dma.hbm_to_vmem [thread:$0]  %s18_s22, 64, %s20_s26, [#allocation3]  }
   0x8   :  { %s278_s1 = smov [#allocation7]  }
   0x9   :  { %s44_s30 = sshll.u32 %s278_s1, 4  ;;  %s45_s30 = int_to_ptr.vmem [resolvable:$true] %s44_s30 }
   0xa   :  { %50 = dma.hbm_to_vmem [thread:$0]  %s43_s29, 256, %s45_s30, [#allocation6], %s275_s23, %s275_s23, %s276_s24  }
   0xb   :  { %268 = dma.done.wait [#allocation3], 64  }
   0xc   :  { %269 = vsyncadd [#allocation3], 4294967232 }
   0xd   :  { %270 = dma.done.wait [#allocation6], 384  }
   0xe   :  { %271 = vsyncadd [#allocation6], 4294966912  ;;  %v162_v0 = vld [vmem:[#allocation5] sm:$0xff]  ;;  %v64_v1 = vld [vmem:[#allocation2] sm:$0xf]  ;;  %vm77_vm0 = vcmask 130048  }
   0xf   :  { %88 = vmatpush.bf16.msra.mxu0 %v162_v0  ;;  %v164_v2 = vld [vmem:[#allocation7 + $0x8] sm:$0xff]  ;;  %v163_v3 = vld [vmem:[#allocation7] sm:$0xff]  ;;  %v171_v4 = vld [vmem:[%s322_s2] ss:$0 sm:$0xff]  ;;  %vm112_vm1 = vcmask 261120   ;;  %s279_s5 = smov [#allocation8]  }
  0x10   :  { %122 = vmatpush.bf16.msra.mxu1 %v164_v2  ;;  %s135_s6 = sshll.u32 %s279_s5, 4  ;;  %s137_s9 = sshll.u32 %s324_s4, 4  ;;  %s136_s6 = int_to_ptr.vmem [resolvable:$true] %s135_s6  ;;  %s138_s9 = int_to_ptr.hbm [resolvable:$true] %s137_s9 }
  0x12   :  { %152 = vmatmul.msk.bf16.vlgmr.msra.gmra.mxu0 %vm77_vm0, %v64_v1 }
  0x14   :  { %123 = vmatpush.bf16.msra.mxu1 %v163_v3 }
  0x8f   :  { %v90_v5 = vpop.f32.mrf.mxu0 }
  0x90   :  { %v91_v6 = vadd.f32 %v171_v4, %v90_v5 }
  0x92   :  { %v94_v7 = vmax.f32 %v91_v6, 0.0 }
  0x94   :  { %v95_v8 = vpack.c.bf16 %v94_v7, %v94_v7 }
  0x96   :  { %161 = vmatmul.msk.bf16.vlgmr.msra.gmra.mxu1 %vm112_vm1, %v95_v8 }
  0x97   :  { %v92_v9 = vpop.f32.mrf.mxu0 }
 0x113   :  { %v125_v10 = vpop.f32.mrf.mxu1 }
 0x114   :  { %129 = vst [vmem:[#allocation8] sm:$0xff] %v125_v10 }
 0x115   :  { %140 = dma.vmem_to_hbm [thread:$0]  %s136_s6, 128, %s138_s9, [#allocation4]  }
 0x11b   :  { %v127_v11 = vpop.f32.mrf.mxu1 }
 0x11c   :  { %272 = dma.done.wait [#allocation4], 128  }
 0x11d   :  { %273 = vsyncadd [#allocation4], 4294967168 }
 0x11e   :  { %145 = vsyncpa [#allocation3], 1 }
 0x11f   :  { %146 = vsyncpa [#allocation6], 1 }
 0x120   :  { %147 = vsyncpa [#allocation4], 1 }

</bundles_post_ra>
